<compile_context>
chip_gen: v7x
topology: tpu7x:2x2x1
jax: 0.10.0
libtpu: 0.0.40
codegen_flags: <defaults>
</compile_context>

<pallas_src>
import functools

import jax
import jax.numpy as jnp
from jax import lax
from jax.experimental import pallas as pl
from jax.experimental.pallas import tpu as pltpu

MAX_NORM = 1.0
EPS = 1e-7  # torch.embedding_renorm_ epsilon (used in the pure-JAX reference)


def _als_kernel(u_ref, i_ref, o_ref):
    # u_ref, i_ref: (TB, D) gathered embedding rows in table dtype
    #               (batch on sublanes, features on lanes).
    # o_ref:        (TB, 1) f32 sigmoid scores.
    u = u_ref[...].astype(jnp.float32)
    it = i_ref[...].astype(jnp.float32)

    # max_norm=1 renorm of the looked-up rows (per batch row).  Compare on the
    # squared norm; rsqrt lands on the otherwise-idle EUP slot.  The D-reductions
    # are lane reductions (XLU slot), free next to the input DMA.
    u_sq = jnp.sum(u * u, axis=1, keepdims=True)          # (TB, 1)
    i_sq = jnp.sum(it * it, axis=1, keepdims=True)        # (TB, 1)
    u_scale = jnp.where(u_sq > MAX_NORM * MAX_NORM, MAX_NORM * lax.rsqrt(u_sq), 1.0)
    i_scale = jnp.where(i_sq > MAX_NORM * MAX_NORM, MAX_NORM * lax.rsqrt(i_sq), 1.0)

    # sum_d (s_u*u_d)*(s_i*i_d) == s_u*s_i * sum_d u_d*i_d -> scale once on (TB, 1).
    ui = jnp.sum(u * it, axis=1, keepdims=True) * (u_scale * i_scale)
    o_ref[...] = jax.nn.sigmoid(ui)


def _reference(users_table, items_table, u_idx, i_idx):
    # Pure-JAX mirror of the PyTorch forward (torch-style renorm with eps).
    # Also used as the tiny-batch fast path.
    u = users_table[u_idx].astype(jnp.float32)
    it = items_table[i_idx].astype(jnp.float32)
    un = jnp.linalg.norm(u, axis=-1, keepdims=True)
    inn = jnp.linalg.norm(it, axis=-1, keepdims=True)
    u = jnp.where(un > MAX_NORM, u * (MAX_NORM / (un + EPS)), u)
    it = jnp.where(inn > MAX_NORM, it * (MAX_NORM / (inn + EPS)), it)
    return jax.nn.sigmoid(jnp.sum(u * it, axis=-1))


def _round_up(x, m):
    return ((x + m - 1) // m) * m


def _padded_vmem_bytes(rows, cols, dtype):
    # Pessimistic (8, 128)-tiled VMEM footprint of a single buffer.
    return _round_up(rows, 8) * _round_up(cols, 128) * jnp.dtype(dtype).itemsize


@functools.partial(jax.jit, static_argnames=("tb", "min_pallas_batch"))
def als_forward(users_table, items_table, u_idx, i_idx, *, tb=8192,
                min_pallas_batch=512):
    """ALS forward.  users_table: (n_users, D), items_table: (n_items, D),
    u_idx / i_idx: (B,) int32.  Returns (B,) f32 sigmoid scores."""
    B = u_idx.shape[0]
    D = users_table.shape[1]

    # Tiny batches: the whole problem is a few KiB; XLA's fused
    # gather+reduce+sigmoid beats slab materialization + a pallas_call launch.
    if B < min_pallas_batch:
        return _reference(users_table, items_table, u_idx, i_idx)

    # --- batch tiling --------------------------------------------------------
    b128 = _round_up(B, 128)                       # lane-aligned batch
    cap = max(128, (tb // 128) * 128)              # requested tile, lane-aligned
    if b128 > cap:
        tb_eff = cap                               # already >= 2 grid steps
    elif b128 >= 2048:
        # Fits in one tile but big enough that splitting it in two is cheap:
        # gives multi-TensorCore parts (v7x) two "parallel" steps to shard.
        tb_eff = max(128, _round_up((b128 + 1) // 2, 128))
    else:
        tb_eff = b128                              # single small tile
    bp = _round_up(b128, tb_eff)

    # Pad only the (B,) index vectors (cheap); padded slots look up row 0 and
    # are sliced off below.  The gathered (B, D) slabs are never re-padded,
    # re-cast or transposed on the XLA side.
    pad = bp - B
    u_idx_p = jnp.pad(u_idx, (0, pad)) if pad else u_idx
    i_idx_p = jnp.pad(i_idx, (0, pad)) if pad else i_idx

    # Embedding gather in XLA, streamed untransposed and in table dtype (bf16
    # tables stay bf16 in HBM/VMEM; the kernel upcasts in-register).
    # TODO(synk): for very large batches the gather itself could be fused into
    # the kernel (scalar-prefetched indices + manual DMA row gather) to shave
    # the remaining slab write+read; kept in XLA since tables may exceed VMEM.
    u_slab = users_table[u_idx_p]                  # (bp, D), table dtype
    i_slab = items_table[i_idx_p]                  # (bp, D), table dtype

    itemsize = jnp.dtype(users_table.dtype).itemsize
    cost = pl.CostEstimate(
        flops=6 * bp * D,                          # dot + two squared norms + scales
        transcendentals=3 * bp,                    # 2x rsqrt + sigmoid per row
        bytes_accessed=2 * bp * D * itemsize + bp * 4,
    )
    # Pessimistic (lane-padded) footprint: 2 inputs + 1 output, double-buffered.
    vmem_bytes = (2 * 2 * _padded_vmem_bytes(tb_eff, D, users_table.dtype)
                  + 2 * _padded_vmem_bytes(tb_eff, 1, jnp.float32))
    vmem_limit = int(min(max(vmem_bytes + (4 << 20), 32 << 20), 48 << 20))

    out = pl.pallas_call(
        _als_kernel,
        out_shape=jax.ShapeDtypeStruct((bp, 1), jnp.float32),
        grid_spec=pltpu.PrefetchScalarGridSpec(
            num_scalar_prefetch=0,
            grid=(bp // tb_eff,),
            in_specs=[
                pl.BlockSpec((tb_eff, D), lambda b: (b, 0)),
                pl.BlockSpec((tb_eff, D), lambda b: (b, 0)),
            ],
            out_specs=pl.BlockSpec((tb_eff, 1), lambda b: (b, 0)),
        ),
        compiler_params=pltpu.CompilerParams(
            # Batch axis is embarrassingly parallel -> shards across both
            # TensorCores on v7x whenever the grid has >= 2 steps.
            dimension_semantics=("parallel",),
            vmem_limit_bytes=vmem_limit,
        ),
        cost_estimate=cost,
    )(u_slab, i_slab)

    return out[:B, 0]


if __name__ == "__main__":
    n_users, n_items, dim = 64, 128, 32

    key = jax.random.PRNGKey(0)
    k_u, k_i, k_ui, k_ii, k_uj, k_ij = jax.random.split(key, 6)

    # nn.Embedding default init: N(0, 1).  Deterministic synthetic params.
    users_table = jax.random.normal(k_u, (n_users, dim), dtype=jnp.float32)
    items_table = jax.random.normal(k_i, (n_items, dim), dtype=jnp.float32)

    # 1) Small batch (typical module usage) forced through the Pallas kernel.
    batch = 8
    u_idx = jax.random.randint(k_ui, (batch,), 0, n_users, dtype=jnp.int32)
    i_idx = jax.random.randint(k_ii, (batch,), 0, n_items, dtype=jnp.int32)
    logits = als_forward(users_table, items_table, u_idx, i_idx, min_pallas_batch=0)
    logits = jax.block_until_ready(logits)
    ref = _reference(users_table, items_table, u_idx, i_idx)
    assert logits.shape == (batch,)
    assert jnp.allclose(logits, ref, atol=1e-5, rtol=1e-5)

    # 2) Larger batch exercising the default dispatch and a multi-step grid.
    batch2 = 4096
    u_idx2 = jax.random.randint(k_uj, (batch2,), 0, n_users, dtype=jnp.int32)
    i_idx2 = jax.random.randint(k_ij, (batch2,), 0, n_items, dtype=jnp.int32)
    logits2 = als_forward(users_table, items_table, u_idx2, i_idx2)
    logits2 = jax.block_until_ready(logits2)
    ref2 = _reference(users_table, items_table, u_idx2, i_idx2)
    assert logits2.shape == (batch2,)
    assert jnp.allclose(logits2, ref2, atol=1e-5, rtol=1e-5)

    print("KERNEL_OK")
</pallas_src>

<mosaic_0001>
module attributes {stable_mosaic.version = 11 : i64} {
  func.func @_als_kernel(%arg0: i32, %arg1: memref<128x32xf32, #tpu.memory_space<vmem>>, %arg2: memref<128x32xf32, #tpu.memory_space<vmem>>, %arg3: memref<128x1xf32, #tpu.memory_space<vmem>>) attributes {dimension_semantics = [#tpu.dimension_semantics<parallel>], iteration_bounds = array<i64: 1>, scalar_prefetch = 0 : i64, scratch_operands = 0 : i64, tpu.core_type = #tpu.core_type<tc>, window_params = [{transform_indices = @transform_0, window_bounds = array<i64: 128, 32>}, {transform_indices = @transform_1, window_bounds = array<i64: 128, 32>}, {transform_indices = @transform_2, window_bounds = array<i64: 128, 1>}]} {
    %c0 = arith.constant 0 : index
    %c0_0 = arith.constant 0 : index
    %0 = vector.load %arg1[%c0, %c0_0] : memref<128x32xf32, #tpu.memory_space<vmem>>, vector<128x32xf32>
    %c0_1 = arith.constant 0 : index
    %c0_2 = arith.constant 0 : index
    %1 = vector.load %arg2[%c0_1, %c0_2] : memref<128x32xf32, #tpu.memory_space<vmem>>, vector<128x32xf32>
    %2 = arith.mulf %0, %0 : vector<128x32xf32>
    %cst = arith.constant dense<0.000000e+00> : vector<128xf32>
    %3 = vector.multi_reduction <add>, %2, %cst [1] : vector<128x32xf32> to vector<128xf32>
    %4 = vector.shape_cast %3 : vector<128xf32> to vector<128x1xf32>
    %5 = arith.mulf %1, %1 : vector<128x32xf32>
    %cst_3 = arith.constant dense<0.000000e+00> : vector<128xf32>
    %6 = vector.multi_reduction <add>, %5, %cst_3 [1] : vector<128x32xf32> to vector<128xf32>
    %7 = vector.shape_cast %6 : vector<128xf32> to vector<128x1xf32>
    %cst_4 = arith.constant 1.000000e+00 : f32
    %8 = vector.broadcast %cst_4 : f32 to vector<128x1xf32>
    %9 = arith.cmpf ogt, %4, %8 : vector<128x1xf32>
    %10 = math.rsqrt %4 : vector<128x1xf32>
    %cst_5 = arith.constant 1.000000e+00 : f32
    %11 = vector.broadcast %cst_5 : f32 to vector<128x1xf32>
    %12 = arith.mulf %11, %10 : vector<128x1xf32>
    %cst_6 = arith.constant 1.000000e+00 : f32
    %13 = vector.broadcast %cst_6 : f32 to vector<128x1xf32>
    %14 = arith.select %9, %12, %13 : vector<128x1xi1>, vector<128x1xf32>
    %cst_7 = arith.constant 1.000000e+00 : f32
    %15 = vector.broadcast %cst_7 : f32 to vector<128x1xf32>
    %16 = arith.cmpf ogt, %7, %15 : vector<128x1xf32>
    %17 = math.rsqrt %7 : vector<128x1xf32>
    %cst_8 = arith.constant 1.000000e+00 : f32
    %18 = vector.broadcast %cst_8 : f32 to vector<128x1xf32>
    %19 = arith.mulf %18, %17 : vector<128x1xf32>
    %cst_9 = arith.constant 1.000000e+00 : f32
    %20 = vector.broadcast %cst_9 : f32 to vector<128x1xf32>
    %21 = arith.select %16, %19, %20 : vector<128x1xi1>, vector<128x1xf32>
    %22 = arith.mulf %0, %1 : vector<128x32xf32>
    %cst_10 = arith.constant dense<0.000000e+00> : vector<128xf32>
    %23 = vector.multi_reduction <add>, %22, %cst_10 [1] : vector<128x32xf32> to vector<128xf32>
    %24 = vector.shape_cast %23 : vector<128xf32> to vector<128x1xf32>
    %25 = arith.mulf %14, %21 : vector<128x1xf32>
    %26 = arith.mulf %24, %25 : vector<128x1xf32>
    %27 = arith.negf %26 : vector<128x1xf32>
    %28 = math.exp %27 : vector<128x1xf32>
    %cst_11 = arith.constant 1.000000e+00 : f32
    %29 = vector.broadcast %cst_11 : f32 to vector<128x1xf32>
    %30 = arith.addf %29, %28 : vector<128x1xf32>
    %31 = arith.divf %29, %30 : vector<128x1xf32>
    %c0_12 = arith.constant 0 : index
    %c0_13 = arith.constant 0 : index
    %32 = vector.load %arg3[%c0_12, %c0_13] : memref<128x1xf32, #tpu.memory_space<vmem>>, vector<128x1xf32>
    tpu.vector_store %arg3[%c0_12, %c0_13], %31 {strides = array<i32>} : memref<128x1xf32, #tpu.memory_space<vmem>>, vector<128x1xf32>,
    return
  }
  func.func @transform_0(%arg0: i32) -> (i32, i32) {
    %c0_i32 = arith.constant 0 : i32
    %c0_i32_0 = arith.constant 0 : i32
    return %arg0, %c0_i32 : i32, i32
  }
  func.func @transform_1(%arg0: i32) -> (i32, i32) {
    %c0_i32 = arith.constant 0 : i32
    %c0_i32_0 = arith.constant 0 : i32
    return %arg0, %c0_i32 : i32, i32
  }
  func.func @transform_2(%arg0: i32) -> (i32, i32) {
    %c0_i32 = arith.constant 0 : i32
    %c0_i32_0 = arith.constant 0 : i32
    return %arg0, %c0_i32 : i32, i32
  }
}

</mosaic_0001>

<bundles_post_ra>
// kernel: als_forward.1
= control target key start
LH: loop header
LB: loop body
LE: loop exit
PB: predicated region body
PF: predicated region fallthrough
CT: control target
= control target key end

     0   :  { %vm59_vm0 = vcmask 261120   ;;  %s1130_s0 = inlined_call_operand.vmem [shape: f32[128,32], index: 0, kind: input, shape index: {}]   ;;  %s1131_s1 = inlined_call_operand.vmem [shape: f32[128,32], index: 1, kind: input, shape index: {}]   ;;  %s1132_s2 = inlined_call_operand.vmem [shape: f32[128,1], index: 2, kind: output, shape index: {}]  }
   0x1   :  { %v13_v0 = vld [vmem:[%s1130_s0 + $0x10] sm:$0xff]  ;;  %v11_v1 = vld [vmem:[%s1130_s0] sm:$0xff]  ;;  %v14_v2 = vld [vmem:[%s1130_s0 + $0x18] sm:$0xff] }
   0x2   :  { %v45_v3 = vmul.f32 %v13_v0, %v13_v0  ;;  %v43_v4 = vmul.f32 %v11_v1, %v11_v1  ;;  %v46_v5 = vmul.f32 %v14_v2, %v14_v2  ;;  %v652_v6 = vld [vmem:[%s1130_s0 + $0x8] sm:$0xff]  ;;  %v15_v9 = vld [vmem:[%s1130_s0 + $0x20] sm:$0xff]  ;;  %v18_v16 = vld [vmem:[%s1130_s0 + $0x38] sm:$0xff] }
   0x3   :  { %v44_v7 = vmul.f32 %v652_v6, %v652_v6  ;;  %v16_v8 = vld [vmem:[%s1130_s0 + $0x28] sm:$0xff]  ;;  %v47_v15 = vmul.f32 %v15_v9, %v15_v9  ;;  %v17_v17 = vld [vmem:[%s1130_s0 + $0x30] sm:$0xff]  ;;  %v50_v20 = vmul.f32 %v18_v16, %v18_v16  ;;  %v19_v23 = vld [vmem:[%s1130_s0 + $0x40] sm:$0xff] }
   0x4   :  { %v66_v10 = vsel %vm59_vm0, %v45_v3, 0.0  ;;  %v60_v11 = vsel %vm59_vm0, %v43_v4, 0.0  ;;  %v69_v12 = vsel %vm59_vm0, %v46_v5, 0.0  ;;  %v48_v14 = vmul.f32 %v16_v8, %v16_v8  ;;  %v20_v22 = vld [vmem:[%s1130_s0 + $0x48] sm:$0xff]  ;;  %v22_v24 = vld [vmem:[%s1130_s0 + $0x58] sm:$0xff]  ;;  %v21_v26 = vld [vmem:[%s1130_s0 + $0x50] sm:$0xff] }
   0x5   :  { %67 = vadd.xlane.f32.xlu1 %v66_v10  ;;  %61 = vadd.xlane.f32.xlu0 %v60_v11  ;;  %v63_v13 = vsel %vm59_vm0, %v44_v7, 0.0  ;;  %v72_v19 = vsel %vm59_vm0, %v47_v15, 0.0  ;;  %v49_v21 = vmul.f32 %v17_v17, %v17_v17  ;;  %v52_v25 = vmul.f32 %v20_v22, %v20_v22  ;;  %v24_v31 = vld [vmem:[%s1130_s0 + $0x68] sm:$0xff]  ;;  %v23_v32 = vld [vmem:[%s1130_s0 + $0x60] sm:$0xff]  ;;  %v26_v34 = vld [vmem:[%s1130_s0 + $0x78] sm:$0xff] }
   0x6   :  { %v75_v18 = vsel %vm59_vm0, %v48_v14, 0.0  ;;  %v81_v27 = vsel %vm59_vm0, %v50_v20, 0.0  ;;  %v51_v29 = vmul.f32 %v19_v23, %v19_v23  ;;  %v54_v30 = vmul.f32 %v22_v24, %v22_v24  ;;  %v701_v38 = vld [vmem:[%s1131_s1] sm:$0xff]  ;;  %v706_v39 = vld [vmem:[%s1131_s1 + $0x18] sm:$0xff]  ;;  %v713_v42 = vld [vmem:[%s1131_s1 + $0x10] sm:$0xff] }
   0x7   :  { %v78_v28 = vsel %vm59_vm0, %v49_v21, 0.0  ;;  %v53_v33 = vmul.f32 %v21_v26, %v21_v26  ;;  %v87_v35 = vsel %vm59_vm0, %v52_v25, 0.0  ;;  %v56_v36 = vmul.f32 %v24_v31, %v24_v31  ;;  %v718_v43 = vld [vmem:[%s1131_s1 + $0x28] sm:$0xff]  ;;  %v723_v44 = vld [vmem:[%s1131_s1 + $0x20] sm:$0xff]  ;;  %v730_v48 = vld [vmem:[%s1131_s1 + $0x38] sm:$0xff] }
   0x8   :  { %v55_v37 = vmul.f32 %v23_v32, %v23_v32  ;;  %v84_v40 = vsel %vm59_vm0, %v51_v29, 0.0  ;;  %v93_v41 = vsel %vm59_vm0, %v54_v30, 0.0  ;;  %v268_v45 = vmul.f32 %v701_v38, %v11_v1  ;;  %v739_v53 = vld [vmem:[%s1131_s1 + $0x30] sm:$0xff]  ;;  %v751_v57 = vld [vmem:[%s1131_s1 + $0x48] sm:$0xff]  ;;  %v756_v58 = vld [vmem:[%s1131_s1 + $0x40] sm:$0xff] }
   0x9   :  { %70 = vadd.xlane.f32.xlu1 %v69_v12  ;;  %64 = vadd.xlane.f32.xlu0 %v63_v13  ;;  %v271_v46 = vmul.f32 %v706_v39, %v14_v2  ;;  %v58_v47 = vmul.f32 %v26_v34, %v26_v34  ;;  %v270_v49 = vmul.f32 %v713_v42, %v13_v0  ;;  %v90_v52 = vsel %vm59_vm0, %v53_v33, 0.0  ;;  %v761_v59 = vld [vmem:[%s1131_s1 + $0x58] sm:$0xff]  ;;  %v776_v0 = vld [vmem:[%s1131_s1 + $0x50] sm:$0xff]  ;;  %v781_v1 = vld [vmem:[%s1131_s1 + $0x68] sm:$0xff] }
   0xa   :  { %v273_v50 = vmul.f32 %v718_v43, %v16_v8  ;;  %v272_v51 = vmul.f32 %v723_v44, %v15_v9  ;;  %v742_v54 = vsel %vm59_vm0, %v268_v45, 0.0  ;;  %v275_v56 = vmul.f32 %v730_v48, %v18_v16  ;;  %v786_v2 = vld [vmem:[%s1131_s1 + $0x60] sm:$0xff]  ;;  %v25_v8 = vld [vmem:[%s1130_s0 + $0x70] sm:$0xff]  ;;  %v800_v9 = vld [vmem:[%s1131_s1 + $0x78] sm:$0xff] }
   0xb   :  { %v745_v55 = vsel %vm59_vm0, %v271_v46, 0.0  ;;  %v764_v60 = vsel %vm59_vm0, %v270_v49, 0.0  ;;  %v274_v63 = vmul.f32 %v739_v53, %v17_v17  ;;  %v277_v4 = vmul.f32 %v751_v57, %v20_v22  ;;  %v811_v14 = vld [vmem:[%s1131_s1 + $0x70] sm:$0xff] }
   0xc   :  { %v767_v61 = vsel %vm59_vm0, %v273_v50, 0.0  ;;  %v770_v62 = vsel %vm59_vm0, %v272_v51, 0.0  ;;  %v789_v3 = vsel %vm59_vm0, %v275_v56, 0.0  ;;  %v276_v5 = vmul.f32 %v756_v58, %v19_v23 }
   0xd   :  { %76 = vadd.xlane.f32.xlu1 %v75_v18  ;;  %73 = vadd.xlane.f32.xlu0 %v72_v19  ;;  %v279_v7 = vmul.f32 %v761_v59, %v22_v24  ;;  %v803_v10 = vsel %vm59_vm0, %v274_v63, 0.0  ;;  %v278_v11 = vmul.f32 %v776_v0, %v21_v26  ;;  %v281_v12 = vmul.f32 %v781_v1, %v24_v31 }
   0xe   :  { %v280_v13 = vmul.f32 %v786_v2, %v23_v32  ;;  %v814_v15 = vsel %vm59_vm0, %v277_v4, 0.0  ;;  %v817_v16 = vsel %vm59_vm0, %v276_v5, 0.0  ;;  %v283_v18 = vmul.f32 %v800_v9, %v26_v34 }
   0xf   :  { %v820_v17 = vsel %vm59_vm0, %v279_v7, 0.0  ;;  %v824_v19 = vsel %vm59_vm0, %v278_v11, 0.0  ;;  %v827_v20 = vsel %vm59_vm0, %v281_v12, 0.0  ;;  %v282_v22 = vmul.f32 %v811_v14, %v25_v8 }
  0x10   :  { %v830_v21 = vsel %vm59_vm0, %v280_v13, 0.0  ;;  %v99_v23 = vsel %vm59_vm0, %v56_v36, 0.0  ;;  %v96_v24 = vsel %vm59_vm0, %v55_v37, 0.0  ;;  %v57_v25 = vmul.f32 %v25_v8, %v25_v8 }
  0x11   :  { %82 = vadd.xlane.f32.xlu1 %v81_v27  ;;  %79 = vadd.xlane.f32.xlu0 %v78_v28  ;;  %v836_v26 = vsel %vm59_vm0, %v283_v18, 0.0  ;;  %v28_v27 = vld [vmem:[%s1131_s1 + $0x8] sm:$0xff]  ;;  %v842_v28 = vsel %vm59_vm0, %v282_v22, 0.0  ;;  %v105_v29 = vsel %vm59_vm0, %v58_v47, 0.0  ;;  %v108_v32 = vmul.f32 %v701_v38, %v701_v38 }
  0x12   :  { %v102_v30 = vsel %vm59_vm0, %v57_v25, 0.0  ;;  %v109_v31 = vmul.f32 %v28_v27, %v28_v27  ;;  %v110_v36 = vmul.f32 %v713_v42, %v713_v42  ;;  %v113_v38 = vmul.f32 %v718_v43, %v718_v43 }
  0x13   :  { %v124_v34 = vsel %vm59_vm0, %v108_v32, 0.0  ;;  %v115_v42 = vmul.f32 %v730_v48, %v730_v48  ;;  %v114_v46 = vmul.f32 %v739_v53, %v739_v53  ;;  %v116_v49 = vmul.f32 %v756_v58, %v756_v58 }
  0x14   :  { %v127_v33 = vsel %vm59_vm0, %v109_v31, 0.0  ;;  %v139_v45 = vsel %vm59_vm0, %v113_v38, 0.0  ;;  %v119_v51 = vmul.f32 %v761_v59, %v761_v59  ;;  %v120_v58 = vmul.f32 %v786_v2, %v786_v2 }
  0x15   :  { %88 = vadd.xlane.f32.xlu1 %v87_v35  ;;  %85 = vadd.xlane.f32.xlu0 %v84_v40  ;;  %v111_v35 = vmul.f32 %v706_v39, %v706_v39  ;;  %v130_v40 = vsel %vm59_vm0, %v110_v36, 0.0  ;;  %v145_v47 = vsel %vm59_vm0, %v115_v42, 0.0  ;;  %v142_v43 = vsel %vm59_vm0, %v114_v46, 0.0 }
  0x16   :  { %v148_v48 = vsel %vm59_vm0, %v116_v49, 0.0  ;;  %v157_v53 = vsel %vm59_vm0, %v119_v51, 0.0  ;;  %v160_v59 = vsel %vm59_vm0, %v120_v58, 0.0  ;;  %v122_v4 = vmul.f32 %v811_v14, %v811_v14 }
  0x17   :  { %v133_v37 = vsel %vm59_vm0, %v111_v35, 0.0  ;;  %v269_v2 = vmul.f32 %v28_v27, %v652_v6 }
  0x19   :  { %94 = vadd.xlane.f32.xlu1 %v93_v41  ;;  %91 = vadd.xlane.f32.xlu0 %v90_v52  ;;  %v112_v41 = vmul.f32 %v723_v44, %v723_v44  ;;  %v117_v44 = vmul.f32 %v751_v57, %v751_v57  ;;  %v118_v52 = vmul.f32 %v776_v0, %v776_v0  ;;  %v287_v7 = vsel %vm59_vm0, %v269_v2, 0.0 }
  0x1a   :  { %v121_v57 = vmul.f32 %v781_v1, %v781_v1  ;;  %v123_v0 = vmul.f32 %v800_v9, %v800_v9  ;;  %v166_v1 = vsel %vm59_vm0, %v122_v4, 0.0 }
  0x1b   :  { %v136_v39 = vsel %vm59_vm0, %v112_v41, 0.0  ;;  %v151_v50 = vsel %vm59_vm0, %v117_v44, 0.0  ;;  %v154_v56 = vsel %vm59_vm0, %v118_v52, 0.0 }
  0x1c   :  { %v163_v63 = vsel %vm59_vm0, %v121_v57, 0.0  ;;  %v169_v5 = vsel %vm59_vm0, %v123_v0, 0.0 }
  0x1d   :  { %100 = vadd.xlane.f32.xlu1 %v99_v23  ;;  %97 = vadd.xlane.f32.xlu0 %v96_v24 }
  0x21   :  { %106 = vadd.xlane.f32.xlu1 %v105_v29  ;;  %103 = vadd.xlane.f32.xlu0 %v102_v30 }
  0x25   :  { %128 = vadd.xlane.f32.xlu1 %v127_v33  ;;  %125 = vadd.xlane.f32.xlu0 %v124_v34 }
  0x29   :  { %134 = vadd.xlane.f32.xlu1 %v133_v37  ;;  %131 = vadd.xlane.f32.xlu0 %v130_v40 }
  0x2d   :  { %140 = vadd.xlane.f32.xlu1 %v139_v45  ;;  %137 = vadd.xlane.f32.xlu0 %v136_v39 }
  0x31   :  { %146 = vadd.xlane.f32.xlu1 %v145_v47  ;;  %143 = vadd.xlane.f32.xlu0 %v142_v43 }
  0x35   :  { %152 = vadd.xlane.f32.xlu1 %v151_v50  ;;  %149 = vadd.xlane.f32.xlu0 %v148_v48 }
  0x39   :  { %158 = vadd.xlane.f32.xlu1 %v157_v53  ;;  %155 = vadd.xlane.f32.xlu0 %v154_v56 }
  0x3d   :  { %164 = vadd.xlane.f32.xlu1 %v163_v63  ;;  %161 = vadd.xlane.f32.xlu0 %v160_v59 }
  0x41   :  { %170 = vadd.xlane.f32.xlu1 %v169_v5  ;;  %167 = vadd.xlane.f32.xlu0 %v166_v1 }
  0x45   :  { %288 = vadd.xlane.f32.xlu1 %v287_v7  ;;  %285 = vadd.xlane.f32.xlu0 %v742_v54 }
  0x49   :  { %294 = vadd.xlane.f32.xlu1 %v745_v55  ;;  %291 = vadd.xlane.f32.xlu0 %v764_v60 }
  0x4d   :  { %300 = vadd.xlane.f32.xlu1 %v767_v61  ;;  %297 = vadd.xlane.f32.xlu0 %v770_v62 }
  0x51   :  { %306 = vadd.xlane.f32.xlu1 %v789_v3  ;;  %303 = vadd.xlane.f32.xlu0 %v803_v10 }
  0x55   :  { %312 = vadd.xlane.f32.xlu1 %v814_v15  ;;  %309 = vadd.xlane.f32.xlu0 %v817_v16 }
  0x59   :  { %318 = vadd.xlane.f32.xlu1 %v820_v17  ;;  %315 = vadd.xlane.f32.xlu0 %v824_v19 }
  0x5d   :  { %324 = vadd.xlane.f32.xlu1 %v827_v20  ;;  %321 = vadd.xlane.f32.xlu0 %v830_v21 }
  0x61   :  { %330 = vadd.xlane.f32.xlu1 %v836_v26  ;;  %327 = vadd.xlane.f32.xlu0 %v842_v28 }
  0x92   :  { %v909_v6 = vpop.xlane.xlu1 %67  ;;  %v911_v54 = vpop.xlane.xlu0 %61 }
  0x93   :  { %497 = vrsqrt.f32 %v909_v6  ;;  %vm174_vm1 = vcmp.gt.f32.partialorder %v909_v6, 1.0  ;;  %vm172_vm2 = vcmp.gt.f32.partialorder %v911_v54, 1.0 }
  0x94   :  { %499 = vrsqrt.f32 %v911_v54 }
  0x96   :  { %v913_v55 = vpop.xlane.xlu1 %70  ;;  %v915_v60 = vpop.xlane.xlu0 %64 }
  0x97   :  { %501 = vrsqrt.f32 %v913_v55  ;;  %vm175_vm3 = vcmp.gt.f32.partialorder %v913_v55, 1.0  ;;  %vm173_vm4 = vcmp.gt.f32.partialorder %v915_v60, 1.0 }
  0x98   :  { %503 = vrsqrt.f32 %v915_v60 }
  0x9a   :  { %v917_v61 = vpop.xlane.xlu1 %76  ;;  %v919_v62 = vpop.xlane.xlu0 %73 }
  0x9b   :  { %505 = vrsqrt.f32 %v917_v61  ;;  %vm177_vm5 = vcmp.gt.f32.partialorder %v917_v61, 1.0  ;;  %vm176_vm6 = vcmp.gt.f32.partialorder %v919_v62, 1.0 }
  0x9c   :  { %507 = vrsqrt.f32 %v919_v62 }
  0x9d   :  { %v498_v27 = vpop.eup %497 }
  0x9e   :  { %v921_v3 = vpop.xlane.xlu1 %82  ;;  %v923_v8 = vpop.xlane.xlu0 %79  ;;  %v206_v39 = vsel %vm174_vm1, %v498_v27, 1.0 }
  0x9f   :  { %509 = vrsqrt.f32 %v921_v3  ;;  %v500_v28 = vpop.eup %499  ;;  %vm179_vm9 = vcmp.gt.f32.partialorder %v921_v3, 1.0  ;;  %vm178_vm10 = vcmp.gt.f32.partialorder %v923_v8, 1.0 }
  0xa0   :  { %v204_v47 = vsel %vm172_vm2, %v500_v28, 1.0 }
  0xa1   :  { %v502_v29 = vpop.eup %501 }
  0xa2   :  { %v925_v9 = vpop.xlane.xlu1 %88  ;;  %v927_v10 = vpop.xlane.xlu0 %85  ;;  %v207_v48 = vsel %vm175_vm3, %v502_v29, 1.0 }
  0xa3   :  { %v504_v30 = vpop.eup %503  ;;  %vm181_vm13 = vcmp.gt.f32.partialorder %v925_v9, 1.0  ;;  %vm180_vm14 = vcmp.gt.f32.partialorder %v927_v10, 1.0 }
  0xa4   :  { %v205_v51 = vsel %vm173_vm4, %v504_v30, 1.0 }
  0xa5   :  { %v506_v33 = vpop.eup %505 }
  0xa6   :  { %v929_v11 = vpop.xlane.xlu1 %94  ;;  %v931_v12 = vpop.xlane.xlu0 %91  ;;  %v209_v0 = vsel %vm177_vm5, %v506_v33, 1.0 }
  0xa7   :  { %v508_v34 = vpop.eup %507  ;;  %vm183_vm1 = vcmp.gt.f32.partialorder %v929_v11, 1.0  ;;  %vm182_vm2 = vcmp.gt.f32.partialorder %v931_v12, 1.0 }
  0xa8   :  { %v208_v4 = vsel %vm176_vm6, %v508_v34, 1.0 }
  0xa9   :  { %v975_v35 = vpop.eup %509 }
  0xaa   :  { %v933_v13 = vpop.xlane.xlu1 %100  ;;  %v935_v14 = vpop.xlane.xlu0 %97 }
  0xab   :  { %vm185_vm3 = vcmp.gt.f32.partialorder %v933_v13, 1.0  ;;  %vm184_vm4 = vcmp.gt.f32.partialorder %v935_v14, 1.0 }
  0xae   :  { %v937_v15 = vpop.xlane.xlu1 %106  ;;  %v939_v16 = vpop.xlane.xlu0 %103 }
  0xb2   :  { %v129_v17 = vpop.xlane.xlu1 %128  ;;  %v126_v18 = vpop.xlane.xlu0 %125 }
  0xb3   :  { %511 = vrsqrt.f32 %v129_v17  ;;  %vm221_vm7 = vcmp.gt.f32.partialorder %v129_v17, 1.0  ;;  %vm220_vm8 = vcmp.gt.f32.partialorder %v126_v18, 1.0 }
  0xb4   :  { %513 = vrsqrt.f32 %v126_v18 }
  0xb5   :  { %515 = vrsqrt.f32 %v923_v8 }
  0xb6   :  { %v941_v19 = vpop.xlane.xlu1 %134  ;;  %v943_v20 = vpop.xlane.xlu0 %131 }
  0xb7   :  { %517 = vrsqrt.f32 %v941_v19  ;;  %vm223_vm11 = vcmp.gt.f32.partialorder %v941_v19, 1.0  ;;  %vm222_vm12 = vcmp.gt.f32.partialorder %v943_v20, 1.0 }
  0xb8   :  { %519 = vrsqrt.f32 %v943_v20 }
  0xb9   :  { %521 = vrsqrt.f32 %v925_v9 }
  0xba   :  { %v947_v21 = vpop.xlane.xlu1 %140  ;;  %v949_v22 = vpop.xlane.xlu0 %137  ;;  %523 = vrsqrt.f32 %v927_v10 }
  0xbb   :  { %525 = vrsqrt.f32 %v947_v21  ;;  %vm225_vm15 = vcmp.gt.f32.partialorder %v947_v21, 1.0  ;;  %vm224_vm0 = vcmp.gt.f32.partialorder %v949_v22, 1.0  ;;  %v211_v21 = vsel %vm179_vm9, %v975_v35, 1.0 }
  0xbc   :  { %527 = vrsqrt.f32 %v949_v22 }
  0xbd   :  { %529 = vrsqrt.f32 %v929_v11  ;;  %v512_v36 = vpop.eup %511 }
  0xbe   :  { %v955_v23 = vpop.xlane.xlu1 %146  ;;  %v957_v24 = vpop.xlane.xlu0 %143  ;;  %531 = vrsqrt.f32 %v931_v12  ;;  %v253_v42 = vsel %vm221_vm7, %v512_v36, 1.0  ;;  %vm187_vm7 = vcmp.gt.f32.partialorder %v937_v15, 1.0 }
  0xbf   :  { %v514_v38 = vpop.eup %513  ;;  %533 = vrsqrt.f32 %v933_v13  ;;  %v333_v53 = vmul.f32 %v253_v42, %v205_v51  ;;  %vm227_vm5 = vcmp.gt.f32.partialorder %v955_v23, 1.0  ;;  %vm226_vm6 = vcmp.gt.f32.partialorder %v957_v24, 1.0 }
  0xc0   :  { %v516_v41 = vpop.eup %515  ;;  %535 = vrsqrt.f32 %v955_v23  ;;  %v252_v43 = vsel %vm220_vm8, %v514_v38, 1.0 }
  0xc1   :  { %v518_v45 = vpop.eup %517  ;;  %537 = vrsqrt.f32 %v957_v24  ;;  %v332_v63 = vmul.f32 %v252_v43, %v204_v47  ;;  %v210_v22 = vsel %vm178_vm10, %v516_v41, 1.0 }
  0xc2   :  { %v961_v25 = vpop.xlane.xlu1 %152  ;;  %v963_v26 = vpop.xlane.xlu0 %149  ;;  %539 = vrsqrt.f32 %v935_v14  ;;  %v255_v57 = vsel %vm223_vm11, %v518_v45, 1.0 }
  0xc3   :  { %v520_v46 = vpop.eup %519  ;;  %541 = vrsqrt.f32 %v937_v15  ;;  %v335_v60 = vmul.f32 %v255_v57, %v207_v48  ;;  %vm229_vm8 = vcmp.gt.f32.partialorder %v961_v25, 1.0  ;;  %vm228_vm9 = vcmp.gt.f32.partialorder %v963_v26, 1.0 }
  0xc4   :  { %v998_v50 = vpop.eup %521  ;;  %543 = vrsqrt.f32 %v961_v25  ;;  %v254_v58 = vsel %vm222_vm12, %v520_v46, 1.0  ;;  %vm186_vm12 = vcmp.gt.f32.partialorder %v939_v16, 1.0 }
  0xc5   :  { %v524_v52 = vpop.eup %523  ;;  %545 = vrsqrt.f32 %v963_v26  ;;  %v334_v61 = vmul.f32 %v254_v58, %v206_v39  ;;  %v213_v23 = vsel %vm181_vm13, %v998_v50, 1.0 }
  0xc6   :  { %v969_v31 = vpop.xlane.xlu1 %158  ;;  %v971_v32 = vpop.xlane.xlu0 %155  ;;  %547 = vrsqrt.f32 %v939_v16  ;;  %v212_v39 = vsel %vm180_vm14, %v524_v52, 1.0 }
  0xc7   :  { %v526_v56 = vpop.eup %525  ;;  %549 = vrsqrt.f32 %v969_v31  ;;  %vm231_vm10 = vcmp.gt.f32.partialorder %v969_v31, 1.0  ;;  %vm230_vm11 = vcmp.gt.f32.partialorder %v971_v32, 1.0 }
  0xc8   :  { %v528_v59 = vpop.eup %527  ;;  %v257_v55 = vsel %vm225_vm15, %v526_v56, 1.0  ;;  %551 = vrsqrt.f32 %v971_v32 }
  0xc9   :  { %v530_v2 = vpop.eup %529  ;;  %v256_v17 = vsel %vm224_vm0, %v528_v59, 1.0  ;;  %v337_v3 = vmul.f32 %v257_v55, %v209_v0 }
  0xca   :  { %v980_v37 = vpop.xlane.xlu1 %164  ;;  %v982_v40 = vpop.xlane.xlu0 %161  ;;  %v336_v8 = vmul.f32 %v256_v17, %v208_v4  ;;  %v215_v56 = vsel %vm183_vm1, %v530_v2, 1.0  ;;  %vm460_vm1 = vcmask 7168  }
  0xcb   :  { %v532_v54 = vpop.eup %531  ;;  %553 = vrsqrt.f32 %v980_v37  ;;  %vm233_vm13 = vcmp.gt.f32.partialorder %v980_v37, 1.0  ;;  %vm232_vm14 = vcmp.gt.f32.partialorder %v982_v40, 1.0 }
  0xcc   :  { %v534_v62 = vpop.eup %533  ;;  %v214_v57 = vsel %vm182_vm2, %v532_v54, 1.0 }
  0xcd   :  { %v536_v20 = vpop.eup %535  ;;  %v217_v26 = vsel %vm185_vm3, %v534_v62, 1.0 }
  0xce   :  { %v994_v44 = vpop.xlane.xlu1 %170  ;;  %v996_v49 = vpop.xlane.xlu0 %167  ;;  %v259_v36 = vsel %vm227_vm5, %v536_v20, 1.0 }
  0xcf   :  { %v538_v29 = vpop.eup %537  ;;  %v339_v9 = vmul.f32 %v259_v36, %v211_v21  ;;  %vm235_vm15 = vcmp.gt.f32.partialorder %v994_v44, 1.0  ;;  %vm234_vm0 = vcmp.gt.f32.partialorder %v996_v49, 1.0 }
  0xd0   :  { %v540_v34 = vpop.eup %539  ;;  %v258_v42 = vsel %vm226_vm6, %v538_v29, 1.0 }
  0xd1   :  { %v542_v35 = vpop.eup %541  ;;  %v338_v52 = vmul.f32 %v258_v42, %v210_v22 }
  0xd2   :  { %v289_v5 = vpop.xlane.xlu1 %288  ;;  %v286_v1 = vpop.xlane.xlu0 %285  ;;  %v219_v13 = vsel %vm187_vm7, %v542_v35, 1.0 }
  0xd3   :  { %v349_v7 = vmul.f32 %v333_v53, %v289_v5  ;;  %v348_v6 = vmul.f32 %v332_v63, %v286_v1  ;;  %v544_v45 = vpop.eup %543 }
  0xd4   :  { %v546_v47 = vpop.eup %545  ;;  %v261_v58 = vsel %vm229_vm8, %v544_v45, 1.0 }
  0xd5   :  { %v482_v18 = vmul.f32 -1.442695, %v349_v7  ;;  %v481_v19 = vmul.f32 -1.442695, %v348_v6  ;;  %v1041_v51 = vpop.eup %547  ;;  %v260_v63 = vsel %vm228_vm9, %v546_v47, 1.0  ;;  %v216_v7 = vsel %vm184_vm4, %v540_v34, 1.0 }
  0xd6   :  { %v295_v27 = vpop.xlane.xlu1 %294  ;;  %v292_v28 = vpop.xlane.xlu0 %291  ;;  %v341_v6 = vmul.f32 %v261_v58, %v213_v23  ;;  %v340_v54 = vmul.f32 %v260_v63, %v212_v39 }
  0xd7   :  { %555 = vpow2.f32 %v482_v18  ;;  %v351_v30 = vmul.f32 %v335_v60, %v295_v27  ;;  %v350_v33 = vmul.f32 %v334_v61, %v292_v28  ;;  %v550_v53 = vpop.eup %549 }
  0xd8   :  { %557 = vpow2.f32 %v481_v19  ;;  %v552_v0 = vpop.eup %551  ;;  %v263_v12 = vsel %vm231_vm10, %v550_v53, 1.0 }
  0xd9   :  { %559 = vrsqrt.f32 %v982_v40  ;;  %v484_v38 = vmul.f32 -1.442695, %v351_v30  ;;  %v483_v41 = vmul.f32 -1.442695, %v350_v33  ;;  %v554_v1 = vpop.eup %553  ;;  %v262_v60 = vsel %vm230_vm11, %v552_v0, 1.0 }
  0xda   :  { %561 = vrsqrt.f32 %v994_v44  ;;  %v301_v24 = vpop.xlane.xlu1 %300  ;;  %v298_v46 = vpop.xlane.xlu0 %297  ;;  %v343_v15 = vmul.f32 %v263_v12, %v215_v56  ;;  %v265_v22 = vsel %vm233_vm13, %v554_v1, 1.0  ;;  %v342_v28 = vmul.f32 %v262_v60, %v214_v57 }
  0xdb   :  { %563 = vpow2.f32 %v484_v38  ;;  %v353_v43 = vmul.f32 %v337_v3, %v301_v24  ;;  %v352_v48 = vmul.f32 %v336_v8, %v298_v46  ;;  %v345_v40 = vmul.f32 %v265_v22, %v217_v26 }
  0xdc   :  { %565 = vpow2.f32 %v483_v41 }
  0xdd   :  { %567 = vrsqrt.f32 %v996_v49  ;;  %v486_v10 = vmul.f32 -1.442695, %v353_v43  ;;  %v485_v50 = vmul.f32 -1.442695, %v352_v48  ;;  %v218_v49 = vsel %vm186_vm12, %v1041_v51, 1.0 }
  0xde   :  { %v307_v59 = vpop.xlane.xlu1 %306  ;;  %v304_v25 = vpop.xlane.xlu0 %303 }
  0xdf   :  { %569 = vpow2.f32 %v486_v10  ;;  %v355_v4 = vmul.f32 %v339_v9, %v307_v59  ;;  %v354_v5 = vmul.f32 %v338_v52, %v304_v25 }
  0xe0   :  { %571 = vpow2.f32 %v485_v50 }
  0xe1   :  { %v556_v11 = vpop.eup %555  ;;  %v488_v2 = vmul.f32 -1.442695, %v355_v4  ;;  %v487_v62 = vmul.f32 -1.442695, %v354_v5 }
  0xe2   :  { %v558_v55 = vpop.eup %557  ;;  %v413_v61 = vadd.f32 1.0, %v556_v11  ;;  %v313_v17 = vpop.xlane.xlu1 %312 }
  0xe3   :  { %v310_v14 = vpop.xlane.xlu0 %309  ;;  %v560_v18 = vpop.eup %559  ;;  %v412_v31 = vadd.f32 1.0, %v558_v55  ;;  %573 = vpow2.f32 %v488_v2  ;;  %v357_v32 = vmul.f32 %v341_v6, %v313_v17 }
  0xe4   :  { %v356_v19 = vmul.f32 %v340_v54, %v310_v14  ;;  %v562_v20 = vpop.eup %561  ;;  %575 = vrcp.f32 %v413_v61  ;;  %v264_v30 = vsel %vm232_vm14, %v560_v18, 1.0 }
  0xe5   :  { %v564_v21 = vpop.eup %563  ;;  %577 = vrcp.f32 %v412_v31  ;;  %v490_v27 = vmul.f32 -1.442695, %v357_v32  ;;  %v267_v45 = vsel %vm235_vm15, %v562_v20, 1.0  ;;  %v344_v39 = vmul.f32 %v264_v30, %v216_v7 }
  0xe6   :  { %v566_v29 = vpop.eup %565  ;;  %v415_v33 = vadd.f32 1.0, %v564_v21  ;;  %579 = vpow2.f32 %v487_v62  ;;  %v489_v34 = vmul.f32 -1.442695, %v356_v19  ;;  %v319_v3 = vpop.xlane.xlu1 %318  ;;  %v347_v50 = vmul.f32 %v267_v45, %v219_v13 }
  0xe7   :  { %v316_v8 = vpop.xlane.xlu0 %315  ;;  %v568_v35 = vpop.eup %567  ;;  %v414_v36 = vadd.f32 1.0, %v566_v29  ;;  %581 = vpow2.f32 %v490_v27  ;;  %v359_v37 = vmul.f32 %v343_v15, %v319_v3 }
  0xe8   :  { %v358_v38 = vmul.f32 %v342_v28, %v316_v8  ;;  %583 = vrcp.f32 %v415_v33  ;;  %v266_v24 = vsel %vm234_vm0, %v568_v35, 1.0 }
  0xe9   :  { %v570_v41 = vpop.eup %569  ;;  %585 = vrcp.f32 %v414_v36  ;;  %v492_v23 = vmul.f32 -1.442695, %v359_v37  ;;  %v346_v57 = vmul.f32 %v266_v24, %v218_v49 }
  0xea   :  { %v572_v42 = vpop.eup %571  ;;  %v417_v46 = vadd.f32 1.0, %v570_v41  ;;  %587 = vpow2.f32 %v489_v34  ;;  %v491_v47 = vmul.f32 -1.442695, %v358_v38  ;;  %v325_v43 = vpop.xlane.xlu1 %324 }
  0xeb   :  { %v322_v48 = vpop.xlane.xlu0 %321  ;;  %v416_v9 = vadd.f32 1.0, %v572_v42  ;;  %589 = vpow2.f32 %v492_v23  ;;  %v361_v10 = vmul.f32 %v345_v40, %v325_v43 }
  0xec   :  { %v360_v44 = vmul.f32 %v344_v39, %v322_v48  ;;  %591 = vrcp.f32 %v417_v46 }
  0xed   :  { %v574_v52 = vpop.eup %573  ;;  %593 = vrcp.f32 %v416_v9  ;;  %v494_v53 = vmul.f32 -1.442695, %v361_v10 }
  0xee   :  { %v493_v56 = vmul.f32 -1.442695, %v360_v44  ;;  %v576_v58 = vpop.eup %575  ;;  %v419_v63 = vadd.f32 1.0, %v574_v52  ;;  %595 = vpow2.f32 %v491_v47  ;;  %v331_v59 = vpop.xlane.xlu1 %330 }
  0xef   :  { %v328_v25 = vpop.xlane.xlu0 %327  ;;  %v578_v0 = vpop.eup %577  ;;  %462 = vst.msk [vmem:[%s1132_s2 + $0x8] sm:$0xff] %vm460_vm1, %v576_v58  ;;  %597 = vpow2.f32 %v494_v53  ;;  %v363_v16 = vmul.f32 %v347_v50, %v331_v59 }
  0xf0   :  { %v362_v51 = vmul.f32 %v346_v57, %v328_v25  ;;  %v580_v26 = vpop.eup %579  ;;  %461 = vst.msk [vmem:[%s1132_s2] sm:$0xff] %vm460_vm1, %v578_v0  ;;  %599 = vrcp.f32 %v419_v63 }
  0xf1   :  { %v582_v4 = vpop.eup %581  ;;  %v418_v5 = vadd.f32 1.0, %v580_v26  ;;  %601 = vpow2.f32 %v493_v56  ;;  %v496_v1 = vmul.f32 -1.442695, %v363_v16 }
  0xf2   :  { %v584_v7 = vpop.eup %583  ;;  %v421_v11 = vadd.f32 1.0, %v582_v4  ;;  %v495_v12 = vmul.f32 -1.442695, %v362_v51 }
  0xf3   :  { %v586_v2 = vpop.eup %585  ;;  %464 = vst.msk [vmem:[%s1132_s2 + $0x18] sm:$0xff] %vm460_vm1, %v584_v7  ;;  %603 = vrcp.f32 %v418_v5 }
  0xf4   :  { %v588_v6 = vpop.eup %587  ;;  %463 = vst.msk [vmem:[%s1132_s2 + $0x10] sm:$0xff] %vm460_vm1, %v586_v2  ;;  %605 = vrcp.f32 %v421_v11 }
  0xf5   :  { %v590_v54 = vpop.eup %589  ;;  %v420_v55 = vadd.f32 1.0, %v588_v6  ;;  %607 = vpow2.f32 %v496_v1 }
  0xf6   :  { %v592_v13 = vpop.eup %591  ;;  %v423_v60 = vadd.f32 1.0, %v590_v54  ;;  %609 = vpow2.f32 %v495_v12 }
  0xf7   :  { %v594_v61 = vpop.eup %593  ;;  %466 = vst.msk [vmem:[%s1132_s2 + $0x28] sm:$0xff] %vm460_vm1, %v592_v13  ;;  %611 = vrcp.f32 %v420_v55 }
  0xf8   :  { %v596_v62 = vpop.eup %595  ;;  %465 = vst.msk [vmem:[%s1132_s2 + $0x20] sm:$0xff] %vm460_vm1, %v594_v61  ;;  %613 = vrcp.f32 %v423_v60 }
  0xf9   :  { %v598_v17 = vpop.eup %597  ;;  %v422_v14 = vadd.f32 1.0, %v596_v62 }
  0xfa   :  { %v600_v18 = vpop.eup %599  ;;  %v425_v31 = vadd.f32 1.0, %v598_v17 }
  0xfb   :  { %v602_v32 = vpop.eup %601  ;;  %468 = vst.msk [vmem:[%s1132_s2 + $0x38] sm:$0xff] %vm460_vm1, %v600_v18  ;;  %615 = vrcp.f32 %v422_v14 }
  0xfc   :  { %617 = vrcp.f32 %v425_v31  ;;  %v424_v19 = vadd.f32 1.0, %v602_v32 }
  0xfd   :  { %v604_v20 = vpop.eup %603 }
  0xfe   :  { %v606_v15 = vpop.eup %605  ;;  %467 = vst.msk [vmem:[%s1132_s2 + $0x30] sm:$0xff] %vm460_vm1, %v604_v20  ;;  %619 = vrcp.f32 %v424_v19 }
  0xff   :  { %v608_v21 = vpop.eup %607  ;;  %470 = vst.msk [vmem:[%s1132_s2 + $0x48] sm:$0xff] %vm460_vm1, %v606_v15 }
 0x100   :  { %v610_v22 = vpop.eup %609  ;;  %v427_v27 = vadd.f32 1.0, %v608_v21 }
 0x101   :  { %v612_v28 = vpop.eup %611  ;;  %v426_v29 = vadd.f32 1.0, %v610_v22 }
 0x102   :  { %v614_v30 = vpop.eup %613  ;;  %469 = vst.msk [vmem:[%s1132_s2 + $0x40] sm:$0xff] %vm460_vm1, %v612_v28  ;;  %621 = vrcp.f32 %v427_v27 }
 0x103   :  { %472 = vst.msk [vmem:[%s1132_s2 + $0x58] sm:$0xff] %vm460_vm1, %v614_v30  ;;  %623 = vrcp.f32 %v426_v29 }
 0x105   :  { %v616_v33 = vpop.eup %615 }
 0x106   :  { %v618_v34 = vpop.eup %617  ;;  %471 = vst.msk [vmem:[%s1132_s2 + $0x50] sm:$0xff] %vm460_vm1, %v616_v33 }
 0x107   :  { %474 = vst.msk [vmem:[%s1132_s2 + $0x68] sm:$0xff] %vm460_vm1, %v618_v34 }
 0x108   :  { %v620_v3 = vpop.eup %619 }
 0x109   :  { %473 = vst.msk [vmem:[%s1132_s2 + $0x60] sm:$0xff] %vm460_vm1, %v620_v3 }
 0x10c   :  { %v622_v8 = vpop.eup %621 }
 0x10d   :  { %v624_v35 = vpop.eup %623  ;;  %476 = vst.msk [vmem:[%s1132_s2 + $0x78] sm:$0xff] %vm460_vm1, %v622_v8 }
 0x10e   :  { %475 = vst.msk [vmem:[%s1132_s2 + $0x70] sm:$0xff] %vm460_vm1, %v624_v35 }

</bundles_post_ra>
